<compile_context>
chip_gen: v6e
topology: v6e:2x2x1
jax: 0.10.0
libtpu: 0.0.40
codegen_flags: <defaults>
</compile_context>

<pallas_src>
import functools

import jax
import jax.numpy as jnp
from jax import lax
from jax.experimental import pallas as pl
from jax.experimental.pallas import tpu as pltpu


# ----------------------------------------------------------------------------
# Pallas kernel: fused matmul + bias + LayerNorm(H,W) + ReLU
# ----------------------------------------------------------------------------
def _frac_conv_kernel(s_ref, w_ref, b_ref, o_ref, *, nb, hw, eps,
                      use_layer_norm, use_relu):
    # s_ref : (R, nb*HW)     im2col slab chunk, lane-dense (HW = 256-wide spans)
    # w_ref : (Cout, R)      flipped conv-transpose weight matrix
    # b_ref : (Cout, 1)      bias
    # o_ref : (nb, Cout, HW) output block
    # One fused MXU matmul per grid step covering all nb batch elements
    # (a single weight push / drain instead of nb).
    acc = jnp.dot(w_ref[...], s_ref[...],
                  preferred_element_type=jnp.float32)        # (Cout, nb*HW)
    acc = acc + b_ref[...].astype(jnp.float32)               # free VPU broadcast add

    inv_hw = jnp.float32(1.0 / hw)
    for b in range(nb):                      # static unroll; spans are 128-aligned
        span = acc[:, b * hw:(b + 1) * hw]   # (Cout, HW) static lane slice
        if use_layer_norm:
            # Two-pass mean/variance (numerically safe), all vreg-resident.
            mean = jnp.sum(span, axis=-1, keepdims=True) * inv_hw
            cen = span - mean
            var = jnp.sum(cen * cen, axis=-1, keepdims=True) * inv_hw
            span = cen * lax.rsqrt(var + eps)
        if use_relu:
            span = jnp.maximum(span, 0.0)
        o_ref[b] = span.astype(o_ref.dtype)  # full-lane (Cout, 256) unmasked store


# ----------------------------------------------------------------------------
# Grid sizing: fewest steps on single-TC chips, >=2 parallel steps on v7x.
# ----------------------------------------------------------------------------
def _tensorcores_per_chip():
    try:
        kind = jax.devices()[0].device_kind.lower()
    except Exception:
        return 1
    return 2 if ("v7" in kind or "tpu7" in kind) else 1


def _largest_divisor_leq(n, limit):
    limit = max(1, min(limit, n))
    for d in range(limit, 0, -1):
        if n % d == 0:
            return d
    return 1


def _pick_batch_block(n, cap, tc_per_chip):
    if n <= 1:
        return 1
    if tc_per_chip > 1:
        # Keep at least tc_per_chip parallel grid steps so every TensorCore
        # gets work; make each step as fat as possible otherwise.
        return _largest_divisor_leq(n, min(cap, max(1, n // tc_per_chip)))
    # Single TensorCore: fewest grid steps (each step costs ~0.35 us overhead).
    return _largest_divisor_leq(n, cap)


# ----------------------------------------------------------------------------
# Wrapper: single-HLO im2col + pallas_call
# ----------------------------------------------------------------------------
def fractional_convolution(feats, weight, bias, v_coord=None, *, k_size,
                           stride=2, pad=1, output_padding=1, dilation=1,
                           relu=True, layer_norm=True, eps=1e-5,
                           max_batch_block=8):
    """feats: (N, in_chans, H, W); weight: (Cin_total, Cout, K, K) [PyTorch
    ConvTranspose2d layout]; bias: (Cout,). Returns (N, Cout, Hout, Wout)."""
    if v_coord is not None:
        feats = jnp.concatenate([feats, v_coord], axis=1)

    N, Cin, H, W = feats.shape
    Cout = weight.shape[1]
    K = k_size
    Hout = (H - 1) * stride - 2 * pad + dilation * (K - 1) + output_padding + 1
    Wout = (W - 1) * stride - 2 * pad + dilation * (K - 1) + output_padding + 1
    HW = Hout * Wout
    R = Cin * K * K

    pad_lo = dilation * (K - 1) - pad
    pad_hi = dilation * (K - 1) - pad + output_padding
    # TODO(synk): pad > dilation*(K-1) would need negative (crop) padding; not
    # supported here (the module's defaults satisfy this).
    assert pad_lo >= 0 and pad_hi >= 0, "unsupported pad configuration"

    # Single HLO: stride zero-insertion (lhs_dilation) + padding + patch
    # extraction. Output spec "CNHW" puts the patch-row dim first so the
    # lane-dense (R, N*HW) slab is a free reshape (no wrapper transpose).
    # Patch-row order is (c, kh, kw), matching the weight matrix below.
    patches = lax.conv_general_dilated_patches(
        feats, (K, K), window_strides=(1, 1),
        padding=((pad_lo, pad_hi), (pad_lo, pad_hi)),
        lhs_dilation=(stride, stride),
        rhs_dilation=(dilation, dilation),
        dimension_numbers=("NCHW", "OIHW", "CNHW"),
        precision=lax.Precision.HIGHEST)          # (R, N, Hout, Wout)
    slab = patches.reshape(R, N * HW)

    # ConvTranspose weight (Cin, Cout, kh, kw) -> flipped regular-conv matrix
    # (Cout, Cin*K*K); tiny (<2 KB) weight-side glue.
    w_mat = jnp.transpose(weight, (1, 0, 2, 3))[:, :, ::-1, ::-1].reshape(Cout, R)
    b_col = bias.reshape(Cout, 1).astype(w_mat.dtype)

    nb = _pick_batch_block(N, max_batch_block, _tensorcores_per_chip())
    grid = (N // nb,)

    kernel = functools.partial(
        _frac_conv_kernel, nb=nb, hw=HW, eps=eps,
        use_layer_norm=layer_norm, use_relu=relu)

    bpe = jnp.dtype(feats.dtype).itemsize
    cost = pl.CostEstimate(
        flops=2 * N * Cout * R * HW + 8 * N * Cout * HW,
        transcendentals=N * Cout,
        bytes_accessed=(slab.size + w_mat.size + b_col.size + N * Cout * HW) * bpe)

    out = pl.pallas_call(
        kernel,
        out_shape=jax.ShapeDtypeStruct((N, Cout, HW), feats.dtype),
        grid_spec=pltpu.PrefetchScalarGridSpec(
            num_scalar_prefetch=0,
            grid=grid,
            in_specs=[
                pl.BlockSpec((R, nb * HW), lambda i: (0, i)),    # slab chunk
                pl.BlockSpec((Cout, R), lambda i: (0, 0)),       # weights
                pl.BlockSpec((Cout, 1), lambda i: (0, 0)),       # bias
            ],
            out_specs=pl.BlockSpec((nb, Cout, HW), lambda i: (i, 0, 0)),
        ),
        compiler_params=pltpu.CompilerParams(
            dimension_semantics=("parallel",)),
        cost_estimate=cost,
    )(slab, w_mat, b_col)

    return out.reshape(N, Cout, Hout, Wout)


# ----------------------------------------------------------------------------
# Plain-JAX reference (XLA conv) for a sanity check
# ----------------------------------------------------------------------------
def _reference(feats, weight, bias, v_coord, *, k_size, stride, pad,
               output_padding, dilation, relu, layer_norm, eps=1e-5):
    x = jnp.concatenate([feats, v_coord], axis=1) if v_coord is not None else feats
    K = k_size
    w_conv = jnp.transpose(weight, (1, 0, 2, 3))[:, :, ::-1, ::-1]
    pad_lo = dilation * (K - 1) - pad
    pad_hi = dilation * (K - 1) - pad + output_padding
    y = lax.conv_general_dilated(
        x, w_conv,
        window_strides=(1, 1),
        padding=((pad_lo, pad_hi), (pad_lo, pad_hi)),
        lhs_dilation=(stride, stride),
        rhs_dilation=(dilation, dilation),
        dimension_numbers=("NCHW", "OIHW", "NCHW"),
        precision=lax.Precision.HIGHEST)
    y = y + bias.reshape(1, -1, 1, 1)
    if layer_norm:
        mean = jnp.mean(y, axis=(2, 3), keepdims=True)
        var = jnp.mean((y - mean) ** 2, axis=(2, 3), keepdims=True)
        y = (y - mean) * lax.rsqrt(var + eps)
    if relu:
        y = jnp.maximum(y, 0.0)
    return y


if __name__ == "__main__":
    # Module config: FractionalConvolution(in_chans=4, out_chans=8, k_size=3,
    #   stride=2, pad=1, output_padding=1, dilation=1, relu=True,
    #   v_coord=True, layer_norm=True, size=(16, 16))
    in_chans, out_chans, k_size = 4, 8, 3
    stride, pad, output_padding, dilation = 2, 1, 1, 1
    N, H, W = 2, 8, 8  # output spatial -> 16 x 16, matching size=(16, 16)

    key = jax.random.PRNGKey(0)
    k_x, k_v, k_w, k_b = jax.random.split(key, 4)

    feats = jax.random.normal(k_x, (N, in_chans, H, W), jnp.float32)
    v_coord = jax.random.normal(k_v, (N, 1, H, W), jnp.float32)

    cin_total = in_chans + 1  # v_coord channel appended
    # truncnorm.rvs(-1, 1) weight init (deterministic here).
    weight = jax.random.truncated_normal(
        k_w, -1.0, 1.0, (cin_total, out_chans, k_size, k_size)).astype(jnp.float32)
    # default ConvTranspose2d bias init: U(-1/sqrt(fan_in), 1/sqrt(fan_in))
    fan_in = cin_total * k_size * k_size
    bound = 1.0 / (fan_in ** 0.5)
    bias = jax.random.uniform(k_b, (out_chans,), jnp.float32, -bound, bound)

    out = fractional_convolution(
        feats, weight, bias, v_coord,
        k_size=k_size, stride=stride, pad=pad, output_padding=output_padding,
        dilation=dilation, relu=True, layer_norm=True)
    out = jax.block_until_ready(out)

    ref = _reference(
        feats, weight, bias, v_coord,
        k_size=k_size, stride=stride, pad=pad, output_padding=output_padding,
        dilation=dilation, relu=True, layer_norm=True)
    assert out.shape == (N, out_chans, 16, 16), out.shape
    assert jnp.allclose(out, ref, atol=1e-4, rtol=1e-4), float(
        jnp.max(jnp.abs(out - ref)))

    print("KERNEL_OK")
</pallas_src>

<mosaic_0001>
module attributes {stable_mosaic.version = 11 : i64} {
  func.func @_frac_conv_kernel(%arg0: i32, %arg1: memref<45x512xf32, #tpu.memory_space<vmem>>, %arg2: memref<8x45xf32, #tpu.memory_space<vmem>>, %arg3: memref<8x1xf32, #tpu.memory_space<vmem>>, %arg4: memref<2x8x256xf32, #tpu.memory_space<vmem>>) attributes {dimension_semantics = [#tpu.dimension_semantics<parallel>], iteration_bounds = array<i64: 1>, scalar_prefetch = 0 : i64, scratch_operands = 0 : i64, tpu.core_type = #tpu.core_type<tc>, window_params = [{transform_indices = @transform_0, window_bounds = array<i64: 45, 512>}, {pipeline_mode = #tpu.pipeline_mode<synchronous>, transform_indices = @transform_1, window_bounds = array<i64: 8, 45>}, {pipeline_mode = #tpu.pipeline_mode<synchronous>, transform_indices = @transform_2, window_bounds = array<i64: 8, 1>}, {transform_indices = @transform_3, window_bounds = array<i64: 2, 8, 256>}]} {
    %c0 = arith.constant 0 : index
    %c0_0 = arith.constant 0 : index
    %0 = vector.load %arg2[%c0, %c0_0] : memref<8x45xf32, #tpu.memory_space<vmem>>, vector<8x45xf32>
    %c0_1 = arith.constant 0 : index
    %c0_2 = arith.constant 0 : index
    %1 = vector.load %arg1[%c0_1, %c0_2] : memref<45x512xf32, #tpu.memory_space<vmem>>, vector<45x512xf32>
    %cst = arith.constant dense<0.000000e+00> : vector<8x512xf32>
    %2 = tpu.matmul %0, %1, %cst {dimension_numbers = #tpu.dot_dimension_numbers<[1], [0], [0], [1], [0, 0, 1, 1], [], []>} : vector<8x45xf32>, vector<45x512xf32>, vector<8x512xf32> -> vector<8x512xf32>
    %c0_3 = arith.constant 0 : index
    %c0_4 = arith.constant 0 : index
    %3 = vector.load %arg3[%c0_3, %c0_4] : memref<8x1xf32, #tpu.memory_space<vmem>>, vector<8x1xf32>
    %4 = vector.broadcast %3 : vector<8x1xf32> to vector<8x512xf32>
    %5 = arith.addf %2, %4 : vector<8x512xf32>
    %6 = vector.extract_strided_slice %5 {offsets = [0, 0], sizes = [8, 256], strides = [1, 1]} : vector<8x512xf32> to vector<8x256xf32>
    %cst_5 = arith.constant dense<0.000000e+00> : vector<8xf32>
    %7 = vector.multi_reduction <add>, %6, %cst_5 [1] : vector<8x256xf32> to vector<8xf32>
    %8 = vector.shape_cast %7 : vector<8xf32> to vector<8x1xf32>
    %cst_6 = arith.constant 3.906250e-03 : f32
    %9 = vector.broadcast %cst_6 : f32 to vector<8x1xf32>
    %10 = arith.mulf %8, %9 : vector<8x1xf32>
    %11 = vector.broadcast %10 : vector<8x1xf32> to vector<8x256xf32>
    %12 = arith.subf %6, %11 : vector<8x256xf32>
    %13 = arith.mulf %12, %12 : vector<8x256xf32>
    %cst_7 = arith.constant dense<0.000000e+00> : vector<8xf32>
    %14 = vector.multi_reduction <add>, %13, %cst_7 [1] : vector<8x256xf32> to vector<8xf32>
    %15 = vector.shape_cast %14 : vector<8xf32> to vector<8x1xf32>
    %cst_8 = arith.constant 3.906250e-03 : f32
    %16 = vector.broadcast %cst_8 : f32 to vector<8x1xf32>
    %17 = arith.mulf %15, %16 : vector<8x1xf32>
    %cst_9 = arith.constant 9.99999974E-6 : f32
    %18 = vector.broadcast %cst_9 : f32 to vector<8x1xf32>
    %19 = arith.addf %17, %18 : vector<8x1xf32>
    %20 = math.rsqrt %19 : vector<8x1xf32>
    %21 = vector.broadcast %20 : vector<8x1xf32> to vector<8x256xf32>
    %22 = arith.mulf %12, %21 : vector<8x256xf32>
    %cst_10 = arith.constant 0.000000e+00 : f32
    %23 = vector.broadcast %cst_10 : f32 to vector<8x256xf32>
    %24 = arith.maximumf %22, %23 : vector<8x256xf32>
    %c0_11 = arith.constant 0 : index
    %c0_12 = arith.constant 0 : index
    %c0_13 = arith.constant 0 : index
    %25 = vector.load %arg4[%c0_11, %c0_12, %c0_13] : memref<2x8x256xf32, #tpu.memory_space<vmem>>, vector<1x8x256xf32>
    %26 = vector.shape_cast %25 : vector<1x8x256xf32> to vector<8x256xf32>
    %27 = vector.shape_cast %24 : vector<8x256xf32> to vector<1x8x256xf32>
    tpu.vector_store %arg4[%c0_11, %c0_12, %c0_13], %27 {strides = array<i32>} : memref<2x8x256xf32, #tpu.memory_space<vmem>>, vector<1x8x256xf32>,
    %28 = vector.extract_strided_slice %5 {offsets = [0, 256], sizes = [8, 256], strides = [1, 1]} : vector<8x512xf32> to vector<8x256xf32>
    %cst_14 = arith.constant dense<0.000000e+00> : vector<8xf32>
    %29 = vector.multi_reduction <add>, %28, %cst_14 [1] : vector<8x256xf32> to vector<8xf32>
    %30 = vector.shape_cast %29 : vector<8xf32> to vector<8x1xf32>
    %cst_15 = arith.constant 3.906250e-03 : f32
    %31 = vector.broadcast %cst_15 : f32 to vector<8x1xf32>
    %32 = arith.mulf %30, %31 : vector<8x1xf32>
    %33 = vector.broadcast %32 : vector<8x1xf32> to vector<8x256xf32>
    %34 = arith.subf %28, %33 : vector<8x256xf32>
    %35 = arith.mulf %34, %34 : vector<8x256xf32>
    %cst_16 = arith.constant dense<0.000000e+00> : vector<8xf32>
    %36 = vector.multi_reduction <add>, %35, %cst_16 [1] : vector<8x256xf32> to vector<8xf32>
    %37 = vector.shape_cast %36 : vector<8xf32> to vector<8x1xf32>
    %cst_17 = arith.constant 3.906250e-03 : f32
    %38 = vector.broadcast %cst_17 : f32 to vector<8x1xf32>
    %39 = arith.mulf %37, %38 : vector<8x1xf32>
    %cst_18 = arith.constant 9.99999974E-6 : f32
    %40 = vector.broadcast %cst_18 : f32 to vector<8x1xf32>
    %41 = arith.addf %39, %40 : vector<8x1xf32>
    %42 = math.rsqrt %41 : vector<8x1xf32>
    %43 = vector.broadcast %42 : vector<8x1xf32> to vector<8x256xf32>
    %44 = arith.mulf %34, %43 : vector<8x256xf32>
    %cst_19 = arith.constant 0.000000e+00 : f32
    %45 = vector.broadcast %cst_19 : f32 to vector<8x256xf32>
    %46 = arith.maximumf %44, %45 : vector<8x256xf32>
    %c1 = arith.constant 1 : index
    %c0_20 = arith.constant 0 : index
    %c0_21 = arith.constant 0 : index
    %47 = vector.load %arg4[%c1, %c0_20, %c0_21] : memref<2x8x256xf32, #tpu.memory_space<vmem>>, vector<1x8x256xf32>
    %48 = vector.shape_cast %47 : vector<1x8x256xf32> to vector<8x256xf32>
    %49 = vector.shape_cast %46 : vector<8x256xf32> to vector<1x8x256xf32>
    tpu.vector_store %arg4[%c1, %c0_20, %c0_21], %49 {strides = array<i32>} : memref<2x8x256xf32, #tpu.memory_space<vmem>>, vector<1x8x256xf32>,
    return
  }
  func.func @transform_0(%arg0: i32) -> (i32, i32) {
    %c0_i32 = arith.constant 0 : i32
    %c0_i32_0 = arith.constant 0 : i32
    return %c0_i32, %arg0 : i32, i32
  }
  func.func @transform_1(%arg0: i32) -> (i32, i32) {
    %c0_i32 = arith.constant 0 : i32
    %c0_i32_0 = arith.constant 0 : i32
    %c0_i32_1 = arith.constant 0 : i32
    return %c0_i32, %c0_i32_0 : i32, i32
  }
  func.func @transform_2(%arg0: i32) -> (i32, i32) {
    %c0_i32 = arith.constant 0 : i32
    %c0_i32_0 = arith.constant 0 : i32
    %c0_i32_1 = arith.constant 0 : i32
    return %c0_i32, %c0_i32_0 : i32, i32
  }
  func.func @transform_3(%arg0: i32) -> (i32, i32, i32) {
    %c0_i32 = arith.constant 0 : i32
    %c0_i32_0 = arith.constant 0 : i32
    %c0_i32_1 = arith.constant 0 : i32
    return %arg0, %c0_i32, %c0_i32_0 : i32, i32, i32
  }
}

</mosaic_0001>

<bundles_post_ra>
// kernel: tpu_custom_call.1
= control target key start
LH: loop header
LB: loop body
LE: loop exit
PB: predicated region body
PF: predicated region fallthrough
CT: control target
= control target key end

     0   :  { %8 = vsyncpa [#allocation3], 0  ;;  %s380_s0 = inlined_call_operand.hbm [shape: f32[45,512], index: 0, kind: input, shape index: {}]   ;;  %s381_s1 = inlined_call_operand.vmem [shape: f32[8,45], index: 1, kind: input, shape index: {}]   ;;  %s382_s2 = inlined_call_operand.vmem [shape: f32[8,1], index: 2, kind: input, shape index: {}]   ;;  %s383_s3 = inlined_call_operand.hbm [shape: f32[2,8,256], index: 3, kind: output, shape index: {}]  }
   0x1   :  { %9 = vsyncpa [#allocation4], 0  ;;  %s340_s12 = smov [#allocation2]  }
   0x2   :  { %s15_s13 = sshll.u32 %s340_s12, 4  ;;  %s16_s13 = int_to_ptr.vmem [resolvable:$true] %s15_s13 }
   0x3   :  { %s304_s14 = scalar_lea.vmem %s16_s13, 3072  ;;  %p309_p1 = scmp.lt.s32.totalorder %s16_s13, %s16_s13 }
   0x4   :  { %p305_p0 = scmp.ne.s32.totalorder %s16_s13, %s304_s14  ;;  %p310_p2 = scmp.lt.s32.totalorder %s304_s14, %s304_s14 }
   0x6   :  { %p311_p3 = por %p310_p2, %p309_p1 }
   0x8   :  { %p312_p4 = pnand %p311_p3, %p305_p0 }
   0xa   :  { %315 = shalt.err (!%p312_p4)
}
   0xb   :  { %s341_s15 = smov 512   ;;  %s342_s16 = smov 32  }
   0xc   :  { %21 = dma.hbm_to_vmem [thread:$0]  %s380_s0, 3072, %s16_s13, [#allocation3], %s341_s15, %s341_s15, %s342_s16  }
   0xd   :  { %336 = dma.done.wait [#allocation3], 3072  }
   0xe   :  { %337 = vsyncadd [#allocation3], 4294964224  ;;  %v343_v0 = vmov 0.0   ;;  %v344_v1 = vmov 0   ;;  %vm64_vm0 = vcmask 1044480   ;;  %v47_v6 = vld [vmem:[#allocation2 + $0x88] sm:$0xff] }
   0xf   :  { %141 = vmatprep.mubr.f32.mxu0 %v343_v0  ;;  %212 = vmatprep.mubr.f32.mxu1 %v343_v0  ;;  %v51_v2 = vld [vmem:[#allocation2 + $0xa8] sm:$0x1f]  ;;  %v53_v3 = vld [vmem:[#allocation2 + $0xb8] sm:$0x1f]  ;;  %v50_v4 = vld [vmem:[#allocation2 + $0xa0] sm:$0x1f] }
  0x10   :  { %291 = vset.pattern.permute.xlu0 %v344_v1  ;;  %277 = vmatprep.subr.msk.mxu0 %vm64_vm0, %v51_v2  ;;  %v52_v5 = vld [vmem:[#allocation2 + $0xb0] sm:$0x1f]  ;;  %v49_v7 = vld [vmem:[#allocation2 + $0x98] sm:$0xff]  ;;  %v46_v8 = vld [vmem:[#allocation2 + $0x80] sm:$0xff]  ;;  %vm60_vm1 = vcmask 367616  }
  0x11   :  { %280 = vmatprep.subr.msk.mxu1 %vm64_vm0, %v53_v3  ;;  %278 = vmatpush1.msk.msra.mxu0 %vm64_vm0, %v50_v4  ;;  %v48_v9 = vld [vmem:[#allocation2 + $0x90] sm:$0xff]  ;;  %v43_v10 = vld [vmem:[#allocation2 + $0x68] sm:$0xff]  ;;  %v45_v11 = vld [vmem:[#allocation2 + $0x78] sm:$0xff] }
  0x12   :  { %281 = vmatpush1.msk.msra.mxu1 %vm64_vm0, %v52_v5  ;;  %99 = vmatprep.subr.mxu0 %v47_v6  ;;  %v42_v12 = vld [vmem:[#allocation2 + $0x60] sm:$0xff]  ;;  %v44_v13 = vld [vmem:[#allocation2 + $0x70] sm:$0xff]  ;;  %v39_v14 = vld [vmem:[#allocation2 + $0x48] sm:$0xff] }
  0x13   :  { %170 = vmatprep.subr.mxu1 %v49_v7  ;;  %100 = vmatpush1.msra.mxu0 %v46_v8  ;;  %v41_v15 = vld [vmem:[#allocation2 + $0x58] sm:$0xff]  ;;  %v38_v16 = vld [vmem:[#allocation2 + $0x40] sm:$0xff]  ;;  %v40_v17 = vld [vmem:[#allocation2 + $0x50] sm:$0xff] }
  0x14   :  { %171 = vmatpush1.msra.mxu1 %v48_v9  ;;  %101 = vmatprep.subr.mxu0 %v43_v10  ;;  %v35_v18 = vld [vmem:[#allocation2 + $0x28] sm:$0xff]  ;;  %v37_v19 = vld [vmem:[#allocation2 + $0x38] sm:$0xff]  ;;  %v34_v20 = vld [vmem:[#allocation2 + $0x20] sm:$0xff] }
  0x15   :  { %172 = vmatprep.subr.mxu1 %v45_v11  ;;  %102 = vmatpush1.msra.mxu0 %v42_v12  ;;  %v36_v21 = vld [vmem:[#allocation2 + $0x30] sm:$0xff]  ;;  %v31_v22 = vld [vmem:[#allocation2 + $0x8] sm:$0xff]  ;;  %v33_v23 = vld [vmem:[#allocation2 + $0x18] sm:$0xff] }
  0x16   :  { %173 = vmatpush1.msra.mxu1 %v44_v13  ;;  %103 = vmatprep.subr.mxu0 %v39_v14  ;;  %v30_v24 = vld [vmem:[#allocation2] sm:$0xff]  ;;  %v32_v25 = vld [vmem:[#allocation2 + $0x10] sm:$0xff] }
  0x17   :  { %174 = vmatprep.subr.mxu1 %v41_v15  ;;  %104 = vmatpush1.msra.mxu0 %v38_v16  ;;  %v29_v26 = vld [vmem:[%s381_s1] sm:$0xff]  ;;  %s345_s1 = smov [#allocation5]  }
  0x18   :  { %175 = vmatpush1.msra.mxu1 %v40_v17  ;;  %105 = vmatprep.subr.mxu0 %v35_v18  ;;  %v54_v27 = vld [vmem:[%s382_s2] sm:$0xff]  ;;  %s265_s2 = sshll.u32 %s345_s1, 4  ;;  %s266_s2 = int_to_ptr.vmem [resolvable:$true] %s265_s2 }
  0x19   :  { %176 = vmatprep.subr.mxu1 %v37_v19  ;;  %106 = vmatpush1.msra.mxu0 %v34_v20  ;;  %s316_s22 = scalar_lea.vmem %s266_s2, 512  ;;  %p321_p6 = scmp.lt.s32.totalorder %s266_s2, %s266_s2 }
  0x1a   :  { %177 = vmatpush1.msra.mxu1 %v36_v21  ;;  %107 = vmatprep.subr.mxu0 %v31_v22  ;;  %p317_p5 = scmp.ne.s32.totalorder %s266_s2, %s316_s22  ;;  %p322_p7 = scmp.lt.s32.totalorder %s316_s22, %s316_s22 }
  0x1b   :  { %178 = vmatprep.subr.mxu1 %v33_v23  ;;  %108 = vmatpush1.msra.mxu0 %v30_v24 }
  0x1c   :  { %179 = vmatpush1.msra.mxu1 %v32_v25  ;;  %279 = vmatmul.mubr.msk.f32.vlgmr.msra.gmra.mxu0 %vm60_vm1, %v29_v26  ;;  %p323_p8 = por %p322_p7, %p321_p6 }
  0x1d   :  { %282 = vmatmul.mubr.msk.f32.vlgmr.msra.gmra.mxu1 %vm60_vm1, %v29_v26  ;;  %57 = vperm.xlu0 %291, %v54_v27  }
  0x1e   :  { %p324_p9 = pnand %p323_p8, %p317_p5 }
  0x98   :  { %v58_v28 = vpop.permute.xlu0 %57 }
  0xdc   :  { %v143_v29 = vpop.f32.mrf.mxu0 }
  0xdd   :  { %v214_v30 = vpop.f32.mrf.mxu1  ;;  %v144_v34 = vadd.f32 %v143_v29, %v58_v28 }
  0xde   :  { %v215_v31 = vadd.f32 %v214_v30, %v58_v28  ;;  %v145_v32 = vpop.f32.mrf.mxu0 }
  0xdf   :  { %v216_v33 = vpop.f32.mrf.mxu1  ;;  %v146_v35 = vadd.f32 %v145_v32, %v58_v28 }
  0xe0   :  { %v217_v36 = vadd.f32 %v216_v33, %v58_v28 }
  0xe1   :  { %v219_v38 = vadd.f32 %v146_v35, %v144_v34 }
  0xe2   :  { %v239_v37 = vadd.f32 %v217_v36, %v215_v31 }
  0xe3   :  { %220 = vadd.xlane.f32.xlu0 %v219_v38 }
  0xe4   :  { %240 = vadd.xlane.f32.xlu1 %v239_v37 }
 0x16c   :  { %v221_v40 = vpop.xlane.xlu0 %220 }
 0x16d   :  { %v241_v39 = vpop.xlane.xlu1 %240  ;;  %v222_v42 = vmul.f32 0.00390625, %v221_v40 }
 0x16e   :  { %v242_v41 = vmul.f32 0.00390625, %v241_v39 }
 0x16f   :  { %v223_v45 = vsub.f32 %v144_v34, %v222_v42  ;;  %v224_v46 = vsub.f32 %v146_v35, %v222_v42 }
 0x170   :  { %v243_v43 = vsub.f32 %v215_v31, %v242_v41  ;;  %v244_v44 = vsub.f32 %v217_v36, %v242_v41 }
 0x171   :  { %v225_v47 = vmul.f32 %v223_v45, %v223_v45  ;;  %v226_v48 = vmul.f32 %v224_v46, %v224_v46 }
 0x172   :  { %v245_v50 = vmul.f32 %v243_v43, %v243_v43  ;;  %v246_v51 = vmul.f32 %v244_v44, %v244_v44 }
 0x173   :  { %v227_v49 = vadd.f32 %v226_v48, %v225_v47 }
 0x174   :  { %v247_v52 = vadd.f32 %v246_v51, %v245_v50 }
 0x175   :  { %228 = vadd.xlane.f32.xlu1 %v227_v49 }
 0x179   :  { %248 = vadd.xlane.f32.xlu1 %v247_v52 }
 0x1fe   :  { %v229_v53 = vpop.xlane.xlu1 %228 }
 0x1ff   :  { %v230_v54 = vmul.f32 0.00390625, %v229_v53 }
 0x201   :  { %v231_v55 = vadd.f32 1e-05, %v230_v54 }
 0x202   :  { %v249_v56 = vpop.xlane.xlu1 %248 }
 0x203   :  { %292 = vrsqrt.f32 %v231_v55  ;;  %v250_v57 = vmul.f32 0.00390625, %v249_v56 }
 0x205   :  { %v251_v58 = vadd.f32 1e-05, %v250_v57 }
 0x207   :  { %294 = vrsqrt.f32 %v251_v58 }
 0x210   :  { %v293_v59 = vpop.eup %292 }
 0x211   :  { %v233_v60 = vmul.f32 %v293_v59, %v223_v45  ;;  %v234_v61 = vmul.f32 %v293_v59, %v224_v46 }
 0x213   :  { %v235_v62 = vmax.f32 %v233_v60, 0.0  ;;  %v236_v63 = vmax.f32 %v234_v61, 0.0 }
 0x214   :  { %v295_v0 = vpop.eup %294 }
 0x215   :  { %237 = vst [vmem:[#allocation5] sm:$0xff] %v235_v62  ;;  %238 = vst [vmem:[#allocation5 + $0x8] sm:$0xff] %v236_v63  ;;  %v253_v1 = vmul.f32 %v295_v0, %v243_v43  ;;  %v254_v2 = vmul.f32 %v295_v0, %v244_v44 }
 0x217   :  { %v255_v3 = vmax.f32 %v253_v1, 0.0  ;;  %v256_v4 = vmax.f32 %v254_v2, 0.0 }
 0x219   :  { %258 = vst [vmem:[#allocation5 + $0x10] sm:$0xff] %v255_v3  ;;  %259 = vst [vmem:[#allocation5 + $0x18] sm:$0xff] %v256_v4 }
 0x21a   :  { %327 = shalt.err (!%p324_p9)
}
 0x21b   :  { %s346_s23 = smov 256   ;;  %s347_s24 = smov 16  }
 0x21c   :  { %271 = dma.vmem_to_hbm [thread:$0]  %s266_s2, 512, %s383_s3, [#allocation4], %s346_s23, %s346_s23, %s347_s24  }
 0x21d   :  { %338 = dma.done.wait [#allocation4], 512  }
 0x21e   :  { %339 = vsyncadd [#allocation4], 4294966784 }
 0x21f   :  { %275 = vsyncpa [#allocation3], 1 }
 0x220   :  { %276 = vsyncpa [#allocation4], 1 }

</bundles_post_ra>
